<compile_context>
chip_gen: v5e
topology: v5e:2x2
jax: 0.10.0
libtpu: 0.0.40
codegen_flags: <defaults>
</compile_context>

<pallas_src>
import math

import jax
import jax.numpy as jnp
from jax.experimental import pallas as pl
from jax.experimental.pallas import tpu as pltpu


def _round_up(x, m):
    return (x + m - 1) // m * m


def _cdiv(a, b):
    return -(-a // b)


def _hann_window(win_length):
    # torch.hann_window default: periodic=True
    n = jnp.arange(win_length, dtype=jnp.float32)
    return 0.5 - 0.5 * jnp.cos(2.0 * math.pi * n / win_length)


def _hz_to_mel(f):
    return 2595.0 * jnp.log10(1.0 + f / 700.0)


def _mel_to_hz(m):
    return 700.0 * (10.0 ** (m / 2595.0) - 1.0)


def _mel_fbanks(n_freqs, f_min, f_max, n_mels, sample_rate):
    # torchaudio.functional.melscale_fbanks(mel_scale="htk", norm=None) -> (n_freqs, n_mels)
    all_freqs = jnp.linspace(0.0, sample_rate / 2.0, n_freqs)
    m_min = _hz_to_mel(jnp.asarray(f_min, jnp.float32))
    m_max = _hz_to_mel(jnp.asarray(f_max, jnp.float32))
    m_pts = jnp.linspace(m_min, m_max, n_mels + 2)
    f_pts = _mel_to_hz(m_pts)
    f_diff = f_pts[1:] - f_pts[:-1]                        # (n_mels+1,)
    slopes = f_pts[None, :] - all_freqs[:, None]           # (n_freqs, n_mels+2)
    down = -slopes[:, :-2] / f_diff[:-1]
    up = slopes[:, 2:] / f_diff[1:]
    return jnp.maximum(0.0, jnp.minimum(down, up)).astype(jnp.float32)


def _frame_and_window_mats(wav, *, n_fft, win_length, hop_length):
    """Center-pad (reflect), extract overlapping frames, build window-folded DFT matrices."""
    B, L = wav.shape
    pad = n_fft // 2
    padded = jnp.pad(wav, ((0, 0), (pad, pad)), mode="reflect")     # center=True
    T = 1 + L // hop_length
    idx = jnp.arange(T)[:, None] * hop_length + jnp.arange(n_fft)[None, :]
    frames = padded[:, idx]                                         # (B, T, n_fft)

    win = _hann_window(win_length)
    if win_length < n_fft:
        lpad = (n_fft - win_length) // 2
        win = jnp.pad(win, (lpad, n_fft - win_length - lpad))

    n_freqs = n_fft // 2 + 1
    n = jnp.arange(n_fft, dtype=jnp.float32)[:, None]
    k = jnp.arange(n_freqs, dtype=jnp.float32)[None, :]
    ang = 2.0 * math.pi * n * k / n_fft
    cos_w = win[:, None] * jnp.cos(ang)                             # window folded in
    sin_w = -(win[:, None] * jnp.sin(ang))
    return frames, T, cos_w, sin_w, n_freqs


def _mel_kernel(f_ref, cs_ref, fb_ref, o_ref):
    """power-spectrogram + mel projection for one tile of frames (rows)."""
    # One wide MXU matmul: [re | im] = frames @ [cos | -sin], f32 accumulation.
    resim = jnp.dot(f_ref[...], cs_ref[...], preferred_element_type=jnp.float32)
    nf = cs_ref.shape[1] // 2
    re = resim[:, :nf]
    im = resim[:, nf:]
    power = re * re + im * im                                        # f32 on the VPU
    # Small f32 mel-filterbank matmul (K = nf_pad, N = n_mels) for tighter parity.
    o_ref[...] = jnp.dot(power, fb_ref[...], preferred_element_type=jnp.float32)


def mel_module_forward(wav, *, sample_rate, n_fft, win_length, hop_length,
                       n_mels, extract_layer=-1, max_tile_rows=512):
    # forward(): mel(wav).transpose(-1,-2).squeeze(1)
    if wav.ndim == 3:
        wav = wav[:, 0, :]                                           # mono channel
    wav = wav.astype(jnp.float32)
    B, _ = wav.shape

    frames, T, cos_w, sin_w, n_freqs = _frame_and_window_mats(
        wav, n_fft=n_fft, win_length=win_length, hop_length=hop_length)

    # zero-pad the frequency axis to a lane-multiple (exact: zero cols x zero fb rows)
    nf_pad = _round_up(n_freqs, 128)
    cos_w = jnp.pad(cos_w, ((0, 0), (0, nf_pad - n_freqs)))
    sin_w = jnp.pad(sin_w, ((0, 0), (0, nf_pad - n_freqs)))
    cs = jnp.concatenate([cos_w, sin_w], axis=1)                     # (n_fft, 2*nf_pad)
    fb = _mel_fbanks(n_freqs, 0.0, sample_rate / 2.0, n_mels, sample_rate)
    fb = jnp.pad(fb, ((0, nf_pad - n_freqs), (0, 0)))                # (nf_pad, n_mels)

    # Row tiling: even split into <=max_tile_rows tiles, >=2 tiles when R allows (v7x 2xTC),
    # tile size a multiple of 16 (bf16 sublane packing).
    R = B * T
    if R <= 16:
        tr = _round_up(max(R, 8), 16)
    else:
        n_tiles = max(2, _cdiv(R, max_tile_rows))
        tr = _round_up(_cdiv(R, n_tiles), 16)
    R_pad = _round_up(R, tr)
    grid_m = R_pad // tr

    frames2d = frames.reshape(R, n_fft)
    frames2d = jnp.pad(frames2d, ((0, R_pad - R), (0, 0)))

    # bf16 matmul inputs for the big STFT dot; f32 power + f32 filterbank in the kernel.
    frames_bf = frames2d.astype(jnp.bfloat16)
    cs_bf = cs.astype(jnp.bfloat16)
    fb_f32 = fb.astype(jnp.float32)

    # Explicit VMEM budget (frames double-buffered, constants single-buffered, f32 temps).
    bytes_frames = tr * n_fft * 2 * 2
    bytes_cs = n_fft * (2 * nf_pad) * 2
    bytes_fb = nf_pad * n_mels * 4
    bytes_out = tr * n_mels * 4 * 2
    bytes_tmp = tr * (3 * nf_pad) * 4
    vmem_budget = int(2 * (bytes_frames + bytes_cs + bytes_fb + bytes_out + bytes_tmp)
                      + (4 << 20))
    vmem_budget = min(vmem_budget, 56 << 20)                         # stay under v7x 64 MiB

    flops = (2 * R_pad * n_fft * (2 * nf_pad)          # STFT dot
             + 2 * R_pad * nf_pad * n_mels             # mel filterbank dot
             + 3 * R_pad * nf_pad)                     # power (mul, mul, add)
    bytes_accessed = (R_pad * n_fft * 2 + n_fft * 2 * nf_pad * 2
                      + nf_pad * n_mels * 4 + R_pad * n_mels * 4)
    cost = pl.CostEstimate(flops=flops, transcendentals=0,
                           bytes_accessed=bytes_accessed)

    out = pl.pallas_call(
        _mel_kernel,
        out_shape=jax.ShapeDtypeStruct((R_pad, n_mels), jnp.float32),
        grid=(grid_m,),
        in_specs=[
            pl.BlockSpec((tr, n_fft), lambda i: (i, 0)),             # framed audio (streamed)
            pl.BlockSpec((n_fft, 2 * nf_pad), lambda i: (0, 0),      # [cos|-sin] DFT, fetched once
                         pipeline_mode=pl.Buffered(1)),
            pl.BlockSpec((nf_pad, n_mels), lambda i: (0, 0),         # mel filterbank, fetched once
                         pipeline_mode=pl.Buffered(1)),
        ],
        out_specs=pl.BlockSpec((tr, n_mels), lambda i: (i, 0)),      # lane-dense, written once
        compiler_params=pltpu.CompilerParams(
            dimension_semantics=("parallel",),
            vmem_limit_bytes=vmem_budget),
        cost_estimate=cost,
    )(frames_bf, cs_bf, fb_f32)

    mel = out[:R].reshape(B, T, n_mels)                              # (B, T, n_mels)
    if extract_layer is not None:
        return mel
    return (mel,)


def _mel_reference(wav, *, sample_rate, n_fft, win_length, hop_length, n_mels):
    """Pure-JAX f32 reference of the same MelSpectrogram math (for a sanity check)."""
    if wav.ndim == 3:
        wav = wav[:, 0, :]
    wav = wav.astype(jnp.float32)
    frames, _, cos_w, sin_w, n_freqs = _frame_and_window_mats(
        wav, n_fft=n_fft, win_length=win_length, hop_length=hop_length)
    hi = jax.lax.Precision.HIGHEST
    re = jnp.einsum("btn,nk->btk", frames, cos_w, precision=hi)
    im = jnp.einsum("btn,nk->btk", frames, sin_w, precision=hi)
    power = re * re + im * im
    fb = _mel_fbanks(n_freqs, 0.0, sample_rate / 2.0, n_mels, sample_rate)
    return jnp.einsum("btk,km->btm", power, fb, precision=hi)


if __name__ == "__main__":
    key = jax.random.PRNGKey(0)

    B, L = 2, 1024
    sample_rate = 16000
    n_fft = 256
    win_length = 256
    hop_length = 64
    n_mels = 128            # torchaudio default; lane-dense output

    # wav like the PyTorch module's 3-D input path: (B, 1, L)
    wav = jax.random.normal(key, (B, 1, L), dtype=jnp.float32)

    mel = mel_module_forward(wav, sample_rate=sample_rate, n_fft=n_fft,
                             win_length=win_length, hop_length=hop_length,
                             n_mels=n_mels)
    mel = jax.block_until_ready(mel)

    T = 1 + L // hop_length
    assert mel.shape == (B, T, n_mels), mel.shape
    assert bool(jnp.all(jnp.isfinite(mel)))

    # check vs f32 reference (kernel STFT inputs are bf16; power + fb matmul are f32)
    ref = _mel_reference(wav, sample_rate=sample_rate, n_fft=n_fft,
                         win_length=win_length, hop_length=hop_length,
                         n_mels=n_mels)
    rel_err = jnp.linalg.norm(mel - ref) / (jnp.linalg.norm(ref) + 1e-12)
    assert float(rel_err) < 0.1, float(rel_err)

    print("KERNEL_OK")
</pallas_src>

<mosaic_0001>
module attributes {stable_mosaic.version = 11 : i64} {
  func.func @_mel_kernel(%arg0: i32, %arg1: memref<32x256xbf16, #tpu.memory_space<vmem>>, %arg2: memref<256x512xbf16, #tpu.memory_space<vmem>>, %arg3: memref<256x128xf32, #tpu.memory_space<vmem>>, %arg4: memref<32x128xf32, #tpu.memory_space<vmem>>) attributes {dimension_semantics = [#tpu.dimension_semantics<parallel>], iteration_bounds = array<i64: 2>, scalar_prefetch = 0 : i64, scratch_operands = 0 : i64, tpu.core_type = #tpu.core_type<tc>, window_params = [{transform_indices = @transform_0, window_bounds = array<i64: 32, 256>}, {pipeline_mode = #tpu.pipeline_mode<synchronous>, transform_indices = @transform_1, window_bounds = array<i64: 256, 512>}, {pipeline_mode = #tpu.pipeline_mode<synchronous>, transform_indices = @transform_2, window_bounds = array<i64: 256, 128>}, {transform_indices = @transform_3, window_bounds = array<i64: 32, 128>}]} {
    %c0 = arith.constant 0 : index
    %c0_0 = arith.constant 0 : index
    %0 = vector.load %arg1[%c0, %c0_0] : memref<32x256xbf16, #tpu.memory_space<vmem>>, vector<32x256xbf16>
    %c0_1 = arith.constant 0 : index
    %c0_2 = arith.constant 0 : index
    %1 = vector.load %arg2[%c0_1, %c0_2] : memref<256x512xbf16, #tpu.memory_space<vmem>>, vector<256x512xbf16>
    %cst = arith.constant dense<0.000000e+00> : vector<32x512xf32>
    %2 = tpu.matmul %0, %1, %cst {dimension_numbers = #tpu.dot_dimension_numbers<[1], [0], [0], [1], [0, 0, 1, 1], [], []>} : vector<32x256xbf16>, vector<256x512xbf16>, vector<32x512xf32> -> vector<32x512xf32>
    %3 = vector.extract_strided_slice %2 {offsets = [0, 0], sizes = [32, 256], strides = [1, 1]} : vector<32x512xf32> to vector<32x256xf32>
    %4 = vector.extract_strided_slice %2 {offsets = [0, 256], sizes = [32, 256], strides = [1, 1]} : vector<32x512xf32> to vector<32x256xf32>
    %5 = arith.mulf %3, %3 : vector<32x256xf32>
    %6 = arith.mulf %4, %4 : vector<32x256xf32>
    %7 = arith.addf %5, %6 : vector<32x256xf32>
    %c0_3 = arith.constant 0 : index
    %c0_4 = arith.constant 0 : index
    %8 = vector.load %arg3[%c0_3, %c0_4] : memref<256x128xf32, #tpu.memory_space<vmem>>, vector<256x128xf32>
    %cst_5 = arith.constant dense<0.000000e+00> : vector<32x128xf32>
    %9 = tpu.matmul %7, %8, %cst_5 {dimension_numbers = #tpu.dot_dimension_numbers<[1], [0], [0], [1], [0, 0, 1, 1], [], []>} : vector<32x256xf32>, vector<256x128xf32>, vector<32x128xf32> -> vector<32x128xf32>
    %c0_6 = arith.constant 0 : index
    %c0_7 = arith.constant 0 : index
    %10 = vector.load %arg4[%c0_6, %c0_7] : memref<32x128xf32, #tpu.memory_space<vmem>>, vector<32x128xf32>
    tpu.vector_store %arg4[%c0_6, %c0_7], %9 {strides = array<i32>} : memref<32x128xf32, #tpu.memory_space<vmem>>, vector<32x128xf32>,
    return
  }
  func.func @transform_0(%arg0: i32) -> (i32, i32) {
    %c0_i32 = arith.constant 0 : i32
    %c0_i32_0 = arith.constant 0 : i32
    return %arg0, %c0_i32 : i32, i32
  }
  func.func @transform_1(%arg0: i32) -> (i32, i32) {
    %c0_i32 = arith.constant 0 : i32
    %c0_i32_0 = arith.constant 0 : i32
    %c0_i32_1 = arith.constant 0 : i32
    return %c0_i32, %c0_i32_0 : i32, i32
  }
  func.func @transform_2(%arg0: i32) -> (i32, i32) {
    %c0_i32 = arith.constant 0 : i32
    %c0_i32_0 = arith.constant 0 : i32
    %c0_i32_1 = arith.constant 0 : i32
    return %c0_i32, %c0_i32_0 : i32, i32
  }
  func.func @transform_3(%arg0: i32) -> (i32, i32) {
    %c0_i32 = arith.constant 0 : i32
    %c0_i32_0 = arith.constant 0 : i32
    return %arg0, %c0_i32 : i32, i32
  }
}

</mosaic_0001>

<bundles_post_ra>
// kernel: tpu_custom_call.1
= control target key start
LH: loop header
LB: loop body
LE: loop exit
PB: predicated region body
PF: predicated region fallthrough
CT: control target
= control target key end

     0   :  { %8 = vsyncpa [#allocation3], 0  ;;  %s1855_s0 = inlined_call_operand.hbm [shape: bf16[64,256], index: 0, kind: input, shape index: {}]   ;;  %s1856_s1 = inlined_call_operand.hbm [shape: bf16[256,512], index: 1, kind: input, shape index: {}]   ;;  %s1857_s2 = inlined_call_operand.hbm [shape: f32[256,128], index: 2, kind: input, shape index: {}]   ;;  %s1858_s3 = inlined_call_operand.hbm [shape: f32[64,128], index: 3, kind: output, shape index: {}]  }
   0x1   :  { %10 = vsyncpa [#allocation3 + $0x1], 0 }
   0x2   :  { %11 = vsyncpa [#allocation6], 0 }
   0x3   :  { %12 = vsyncpa [#allocation4], 0 }
   0x4   :  { %14 = vsyncpa [#allocation4 + $0x1], 0  ;;  %s1670_s12 = smov 0   ;;  %s1672_s13 = smov 0  }
   0x5   :  { %s1674_s14 = smov 0   ;;  %s1676_s15 = smov 0  }
   0x6 LB: > { %s1691_s16 = sadd.s32 4294967295, %s1640_s15   ;;  %s1013_s17 = sadd.s32 4294967294, %s1640_s15   ;;  %s1640_s15 = sphi %s1676_s15, %s1868_s15   ;;  %s1636_s14 = sphi %s1674_s14, %s1867_s14   ;;  %s1632_s13 = sphi %s1672_s13, %s1866_s13   ;;  %s1628_s12 = sphi %s1670_s12, %s1865_s12  }
   0x7   : > { %p40_p0 = scmp.ne.s32.totalorder %s1632_s13, %s1628_s12  ;;  %p41_p1 = scmp.eq.s32.totalorder %s1691_s16, 0 }
   0x8   : > { %p106_p2 = scmp.eq.s32.totalorder %s1691_s16, 1  ;;  %p112_p3 = scmp.eq.s32.totalorder %s1013_s17, 1 }
   0x9   : > { %p1700_p4 = por %p41_p1, %p40_p0  ;;  %p1014_p5 = scmp.ge.s32.totalorder %s1640_s15, 1 }
   0xa   : > { %p1705_p6 = por %p112_p3, %p40_p0  ;;  %p119_p7 = scmp.lt.s32.totalorder %s1640_s15, 3 }
   0xb   : > { %s130_s22 = sshll.u32 %s1856_s1, 4  ;;  %s1642_s24 = smov [#allocation5]   ;;  %s131_s22 = int_to_ptr.hbm [resolvable:$true] %s130_s22 }
   0xc   : > { %p1713_p8 = pnand %p1014_p5, %p119_p7  ;;  %s132_s25 = sshll.u32 %s1642_s24, 4  ;;  %s133_s25 = int_to_ptr.vmem [resolvable:$true] %s132_s25 }
   0xd   : > { %s144_s28 = sshll.u32 %s1857_s2, 4  ;;  %s1643_s29 = smov 256   ;;  %s145_s28 = int_to_ptr.hbm [resolvable:$true] %s144_s28 }
   0xe   : > { %p1419_p9 = pneg %p1713_p8  ;;  %s1644_s30 = smov 16  }
   0xf   : > { %s1645_s4 = smov [#allocation7]   ;;  %s1646_s6 = smov 128  }
  0x10   : > { %p1420_p10 = pnand %p1419_p9, %p41_p1  ;;  %s146_s5 = sshll.u32 %s1645_s4, 4  ;;  %s147_s5 = int_to_ptr.vmem [resolvable:$true] %s146_s5 }
  0x11   : > { %s1647_s7 = smov 8   ;;  %s1729_s8 = sadd.s32 1, %s1640_s15  }
  0x12   : > { %1422 = dma.hbm_to_vmem [thread:$0]  (!%p1420_p10), %s131_s22, 8192, %s133_s25, [#allocation6], %s1643_s29, %s1643_s29, %s1644_s30  }
  0x13   : > { %1425 = dma.hbm_to_vmem [thread:$0]  (!%p1420_p10), %s145_s28, 4096, %s147_s5, [#allocation6], %s1646_s6, %s1646_s6, %s1647_s7  }
  0x14   : > { %s24_s9 = ssub.s32 %s1640_s15, %s1729_s8  ;;  %s27_s10 = sadd.s32 1, %s1636_s14 }
  0x15   : > { %p25_p12 = scmp.eq.s32.totalorder %s24_s9, 0  ;;  %p34_p13 = scmp.ne.s32.totalorder %s1636_s14, %s1632_s13 }
  0x16   : > { %p35_p0 = scmp.eq.s32.totalorder %s1640_s15, 0  ;;  %p1436_p7 = scmp.lt.s32.totalorder %s1640_s15, 2 }
  0x17   : > { %s1738_s11 = scalar_select %p25_p12, %s1636_s14, %s27_s10  }
  0x18   : > { %p36_p3 = por %p35_p0, %p34_p13  ;;  %p1742_p5 = por %p106_p2, %p34_p13 }
  0x19   : > { %s160_s20 = sand.u32 1, %s1636_s14   ;;  %s1305_s22 = sshll.u32 %s1640_s15, 5 }
  0x1a   : > { %s1018_s21 = sshll.u32 %s160_s20, 5  ;;  %s170_s26 = scalar_lea.hbm %s1855_s0, %s1305_s22 }
  0x1b   : > { %s164_s27 = scalar_lea.vmem [#allocation2], %s1018_s21  ;;  %s171_s29 = sshll.u32 %s170_s26, 4  ;;  %s172_s29 = int_to_ptr.hbm [resolvable:$true] %s171_s29 }
  0x1c   : > { %s173_s28 = sshll.u32 %s164_s27, 4  ;;  %p1752_p9 = pnand %p1436_p7, %p36_p3  ;;  %s174_s28 = int_to_ptr.vmem [resolvable:$true] %s173_s28 }
  0x1d   : > { %s161_s4 = scalar_lea.sflag [#allocation3], %s160_s20  ;;  %s1540_s5 = sshra.s32 %s172_s29, 4  ;;  %s1541_s5 = int_to_ptr.hbm [resolvable:$true] %s1540_s5 }
  0x1e   : > { %s1542_s9 = scalar_lea.hbm %s1541_s5, 32  ;;  %p1544_p10 = pneg %p1752_p9 }
  0x1f   : > { %p1543_p2 = scmp.ne.s32.totalorder %s1541_s5, %s1542_s9  ;;  %s1547_s22 = scalar_lea.hbm %s1855_s0, 64 }
  0x20   : > { %p1548_p0 = scmp.lt.s32.totalorder %s1541_s5, %s1855_s0  ;;  %p1549_p3 = scmp.lt.s32.totalorder %s1547_s22, %s1542_s9 }
  0x21   : > { %p1545_p12 = pnand %p1544_p10, %p1543_p2 }
  0x22   : > { %p1550_p7 = por %p1549_p3, %p1548_p0 }
  0x23   : > { %p1546_p13 = pneg %p1545_p12 }
  0x25   : > { %p1551_p11 = pnand %p1550_p7, %p1546_p13 }
  0x27   : > { %1554 = shalt.err (!%p1551_p11)
}
  0x28   : > { %1429 = dma.hbm_to_vmem [thread:$0]  (!%p1752_p9), %s172_s29, 512, %s174_s28, %s161_s4, %s1646_s6, %s1646_s6, %s1647_s7  }
  0x29   : > { %185 = sbr.rel (%p1713_p8) target bundleno = 418 (0x1a2), region = 32  ;;  %s1772_s20 = sand.u32 (!%p1713_p8), 1, %s1632_s13  }
  0x2a   : > { %s1023_s26 = sshll.u32 (!%p1713_p8), %s1772_s20, 5  ;;  %s188_s27 = scalar_lea.sflag (!%p1713_p8), [#allocation3], %s1772_s20 }
  0x2b   : > { %s1778_s5 = scalar_lea.vmem (!%p1713_p8), [#allocation2], %s1023_s26 }
  0x2e   : > { %1615 = dma.done.wait (%p1700_p4), %s188_s27, 512  }
  0x2f   : > { %1617 = vsyncadd (%p1700_p4), %s188_s27, 4294966784 }
  0x30   : > { %1619 = dma.done.wait (%p41_p1), [#allocation6], 12288  }
  0x31   : > { %1621 = vsyncadd (%p41_p1), [#allocation6], 4294955008  ;;  %v1157_v0 = vld [vmem:[#allocation5 + $0xe0] sm:$0xf]  ;;  %v1340_v1 = vld [vmem:[#allocation5 + $0xec] sm:$0xf0] }
  0x32   : > { %v1285_v2 = vld [vmem:[#allocation5 + $0x1e0] sm:$0xf]  ;;  %v1158_v3 = vor.u32 %v1340_v1, %v1157_v0  ;;  %v1372_v4 = vld [vmem:[#allocation5 + $0x1ec] sm:$0xf0]  ;;  %v1338_v5 = vld [vmem:[#allocation5 + $0xe4] sm:$0xf] }
  0x33   : > { %v1159_v6 = vld [vmem:[#allocation5 + $0xf0] sm:$0xf0]  ;;  %v1286_v7 = vor.u32 %v1372_v4, %v1285_v2  ;;  %v1370_v9 = vld [vmem:[#allocation5 + $0x1e4] sm:$0xf]  ;;  %v1141_v11 = vld [vmem:[#allocation5 + $0xc0] sm:$0xf] }
  0x34   : > { %v1162_v8 = vor.u32 %v1338_v5, %v1159_v6  ;;  %v1287_v10 = vld [vmem:[#allocation5 + $0x1f0] sm:$0xf0]  ;;  %635 = vmatpush.bf16.msra.mxu0 %v1158_v3  ;;  %v1336_v13 = vld [vmem:[#allocation5 + $0xcc] sm:$0xf0]  ;;  %v1269_v14 = vld [vmem:[#allocation5 + $0x1c0] sm:$0xf] }
  0x35   : > { %v1290_v12 = vor.u32 %v1370_v9, %v1287_v10  ;;  %v1368_v15 = vld [vmem:[#allocation5 + $0x1cc] sm:$0xf0]  ;;  %654 = vmatpush.bf16.msra.mxu1 %v1286_v7  ;;  %v1142_v16 = vor.u32 %v1336_v13, %v1141_v11  ;;  %v1334_v18 = vld [vmem:[#allocation5 + $0xc4] sm:$0xf]  ;;  %v1143_v19 = vld [vmem:[#allocation5 + $0xd0] sm:$0xf0] }
  0x36   : > { %673 = vmatpush.bf16.msra.mxu2 %v1162_v8  ;;  %v1270_v17 = vor.u32 %v1368_v15, %v1269_v14  ;;  %v1366_v20 = vld [vmem:[#allocation5 + $0x1c4] sm:$0xf]  ;;  %v1146_v21 = vor.u32 %v1334_v18, %v1143_v19  ;;  %v1271_v22 = vld [vmem:[#allocation5 + $0x1d0] sm:$0xf0]  ;;  %v1125_v23 = vld [vmem:[#allocation5 + $0xa0] sm:$0xf] }
  0x37   : > { %692 = vmatpush.bf16.msra.mxu3 %v1290_v12  ;;  %v1332_v24 = vld [vmem:[#allocation5 + $0xac] sm:$0xf0]  ;;  %v1274_v25 = vor.u32 %v1366_v20, %v1271_v22  ;;  %v1253_v26 = vld [vmem:[#allocation5 + $0x1a0] sm:$0xf]  ;;  %v1330_v28 = vld [vmem:[#allocation5 + $0xa4] sm:$0xf] }
  0x38   : > { %v1364_v27 = vld [vmem:[#allocation5 + $0x1ac] sm:$0xf0]  ;;  %636 = vmatpush.bf16.msra.mxu0 %v1142_v16  ;;  %v1126_v29 = vor.u32 %v1332_v24, %v1125_v23  ;;  %v1127_v30 = vld [vmem:[#allocation5 + $0xb0] sm:$0xf0]  ;;  %v1362_v31 = vld [vmem:[#allocation5 + $0x1a4] sm:$0xf] }
  0x39   : > { %v1255_v32 = vld [vmem:[#allocation5 + $0x1b0] sm:$0xf0]  ;;  %655 = vmatpush.bf16.msra.mxu1 %v1270_v17  ;;  %v1254_v33 = vor.u32 %v1364_v27, %v1253_v26  ;;  %v1130_v34 = vor.u32 %v1330_v28, %v1127_v30  ;;  %v1109_v35 = vld [vmem:[#allocation5 + $0x80] sm:$0xf]  ;;  %v1328_v36 = vld [vmem:[#allocation5 + $0x8c] sm:$0xf0] }
  0x3a   : > { %674 = vmatpush.bf16.msra.mxu2 %v1146_v21  ;;  %v1237_v37 = vld [vmem:[#allocation5 + $0x180] sm:$0xf]  ;;  %v1258_v38 = vor.u32 %v1362_v31, %v1255_v32  ;;  %v1360_v39 = vld [vmem:[#allocation5 + $0x18c] sm:$0xf0]  ;;  %v1326_v40 = vld [vmem:[#allocation5 + $0x84] sm:$0xf]  ;;  %v1110_v44 = vor.u32 %v1328_v36, %v1109_v35 }
  0x3b   : > { %693 = vmatpush.bf16.msra.mxu3 %v1274_v25  ;;  %v1111_v41 = vld [vmem:[#allocation5 + $0x90] sm:$0xf0]  ;;  %v1358_v42 = vld [vmem:[#allocation5 + $0x184] sm:$0xf]  ;;  %v1238_v45 = vor.u32 %v1360_v39, %v1237_v37  ;;  %v1093_v47 = vld [vmem:[#allocation5 + $0x60] sm:$0xf] }
  0x3c   : > { %v1239_v43 = vld [vmem:[#allocation5 + $0x190] sm:$0xf0]  ;;  %637 = vmatpush.bf16.msra.mxu0 %v1126_v29  ;;  %v1114_v46 = vor.u32 %v1326_v40, %v1111_v41  ;;  %v1324_v48 = vld [vmem:[#allocation5 + $0x6c] sm:$0xf0]  ;;  %v1221_v49 = vld [vmem:[#allocation5 + $0x160] sm:$0xf] }
  0x3d   : > { %656 = vmatpush.bf16.msra.mxu1 %v1254_v33  ;;  %v1242_v50 = vor.u32 %v1358_v42, %v1239_v43  ;;  %v1356_v51 = vld [vmem:[#allocation5 + $0x16c] sm:$0xf0]  ;;  %v1322_v52 = vld [vmem:[#allocation5 + $0x64] sm:$0xf]  ;;  %v1095_v53 = vld [vmem:[#allocation5 + $0x70] sm:$0xf0]  ;;  %v1094_v56 = vor.u32 %v1324_v48, %v1093_v47 }
  0x3e   : > { %675 = vmatpush.bf16.msra.mxu2 %v1130_v34  ;;  %v1354_v54 = vld [vmem:[#allocation5 + $0x164] sm:$0xf]  ;;  %v1223_v55 = vld [vmem:[#allocation5 + $0x170] sm:$0xf0]  ;;  %v1222_v57 = vor.u32 %v1356_v51, %v1221_v49  ;;  %v1098_v58 = vor.u32 %v1322_v52, %v1095_v53  ;;  %v1077_v59 = vld [vmem:[#allocation5 + $0x40] sm:$0xf] }
  0x3f   : > { %694 = vmatpush.bf16.msra.mxu3 %v1258_v38  ;;  %v1320_v60 = vld [vmem:[#allocation5 + $0x4c] sm:$0xf0]  ;;  %v1205_v61 = vld [vmem:[#allocation5 + $0x140] sm:$0xf]  ;;  %v1226_v62 = vor.u32 %v1354_v54, %v1223_v55  ;;  %v1318_v0 = vld [vmem:[#allocation5 + $0x44] sm:$0xf] }
  0x40   : > { %638 = vmatpush.bf16.msra.mxu0 %v1110_v44  ;;  %v1352_v63 = vld [vmem:[#allocation5 + $0x14c] sm:$0xf0]  ;;  %v1079_v1 = vld [vmem:[#allocation5 + $0x50] sm:$0xf0]  ;;  %v1350_v2 = vld [vmem:[#allocation5 + $0x144] sm:$0xf]  ;;  %v1078_v4 = vor.u32 %v1320_v60, %v1077_v59 }
  0x41   : > { %657 = vmatpush.bf16.msra.mxu1 %v1238_v45  ;;  %v1207_v3 = vld [vmem:[#allocation5 + $0x150] sm:$0xf0]  ;;  %v1206_v5 = vor.u32 %v1352_v63, %v1205_v61  ;;  %v1082_v6 = vor.u32 %v1318_v0, %v1079_v1  ;;  %v1061_v7 = vld [vmem:[#allocation5 + $0x20] sm:$0xf]  ;;  %v1316_v8 = vld [vmem:[#allocation5 + $0x2c] sm:$0xf0] }
  0x42   : > { %676 = vmatpush.bf16.msra.mxu2 %v1114_v46  ;;  %v1189_v9 = vld [vmem:[#allocation5 + $0x120] sm:$0xf]  ;;  %v1210_v10 = vor.u32 %v1350_v2, %v1207_v3  ;;  %v1348_v11 = vld [vmem:[#allocation5 + $0x12c] sm:$0xf0]  ;;  %v1314_v12 = vld [vmem:[#allocation5 + $0x24] sm:$0xf]  ;;  %v1062_v16 = vor.u32 %v1316_v8, %v1061_v7 }
  0x43   : > { %695 = vmatpush.bf16.msra.mxu3 %v1242_v50  ;;  %v1063_v13 = vld [vmem:[#allocation5 + $0x30] sm:$0xf0]  ;;  %v1346_v14 = vld [vmem:[#allocation5 + $0x124] sm:$0xf]  ;;  %v1045_v17 = vld [vmem:[#allocation5] sm:$0xf]  ;;  %v1190_v19 = vor.u32 %v1348_v11, %v1189_v9 }
  0x44   : > { %639 = vmatpush.bf16.msra.mxu0 %v1094_v56  ;;  %v1191_v15 = vld [vmem:[#allocation5 + $0x130] sm:$0xf0]  ;;  %v1312_v18 = vld [vmem:[#allocation5 + $0xc] sm:$0xf0]  ;;  %v1066_v20 = vor.u32 %v1314_v12, %v1063_v13  ;;  %v1173_v21 = vld [vmem:[#allocation5 + $0x100] sm:$0xf] }
  0x45   : > { %658 = vmatpush.bf16.msra.mxu1 %v1222_v57  ;;  %v1344_v22 = vld [vmem:[#allocation5 + $0x10c] sm:$0xf0]  ;;  %v1310_v23 = vld [vmem:[#allocation5 + $0x4] sm:$0xf]  ;;  %v1194_v24 = vor.u32 %v1346_v14, %v1191_v15  ;;  %v1047_v25 = vld [vmem:[#allocation5 + $0x10] sm:$0xf0]  ;;  %v1046_v31 = vor.u32 %v1312_v18, %v1045_v17 }
  0x46   : > { %677 = vmatpush.bf16.msra.mxu2 %v1098_v58  ;;  %v1342_v26 = vld [vmem:[#allocation5 + $0x104] sm:$0xf]  ;;  %v1175_v27 = vld [vmem:[#allocation5 + $0x110] sm:$0xf0]  ;;  %v1029_v28 = vld [vmem:[%s1778_s5] sm:$0xf]  ;;  %v1174_v35 = vor.u32 %v1344_v22, %v1173_v21  ;;  %v1050_v36 = vor.u32 %v1310_v23, %v1047_v25 }
  0x47   : > { %696 = vmatpush.bf16.msra.mxu3 %v1226_v62  ;;  %v1339_v29 = vld [vmem:[#allocation5 + $0xec] sm:$0xf]  ;;  %v1167_v30 = vld [vmem:[#allocation5 + $0xf8] sm:$0xf0]  ;;  %v1307_v32 = vld [vmem:[%s1778_s5 + $0x4] sm:$0xf0]  ;;  %v1178_v39 = vor.u32 %v1342_v26, %v1175_v27 }
  0x48   : > { %640 = vmatpush.bf16.msra.mxu0 %v1078_v4  ;;  %v1371_v33 = vld [vmem:[#allocation5 + $0x1ec] sm:$0xf]  ;;  %v1295_v34 = vld [vmem:[#allocation5 + $0x1f8] sm:$0xf0]  ;;  %v1306_v37 = vld [vmem:[%s1778_s5 + $0x4] sm:$0xf]  ;;  %v1170_v40 = vor.u32 %v1339_v29, %v1167_v30  ;;  %v1792_v44 = vor.u32 %v1307_v32, %v1029_v28 }
  0x49   : > { %659 = vmatpush.bf16.msra.mxu1 %v1206_v5  ;;  %v1031_v38 = vld [vmem:[%s1778_s5 + $0x8] sm:$0xf0]  ;;  %v1165_v41 = vld [vmem:[#allocation5 + $0xe8] sm:$0xf]  ;;  %v1341_v42 = vld [vmem:[#allocation5 + $0xf4] sm:$0xf0]  ;;  %v1298_v45 = vor.u32 %v1371_v33, %v1295_v34 }
  0x4a   : > { %678 = vmatpush.bf16.msra.mxu2 %v1082_v6  ;;  %v1293_v43 = vld [vmem:[#allocation5 + $0x1e8] sm:$0xf]  ;;  %v1373_v46 = vld [vmem:[#allocation5 + $0x1f4] sm:$0xf0]  ;;  %v1335_v47 = vld [vmem:[#allocation5 + $0xcc] sm:$0xf]  ;;  %v1794_v49 = vor.u32 %v1306_v37, %v1031_v38  ;;  %v1166_v52 = vor.u32 %v1341_v42, %v1165_v41 }
  0x4b   : > { %697 = vmatpush.bf16.msra.mxu3 %v1210_v10  ;;  %v1151_v48 = vld [vmem:[#allocation5 + $0xd8] sm:$0xf0]  ;;  %v1367_v50 = vld [vmem:[#allocation5 + $0x1cc] sm:$0xf]  ;;  %v1294_v53 = vor.u32 %v1373_v46, %v1293_v43  ;;  %v1149_v55 = vld [vmem:[#allocation5 + $0xc8] sm:$0xf] }
  0x4c   : > { %641 = vmatpush.bf16.msra.mxu0 %v1062_v16  ;;  %v1279_v51 = vld [vmem:[#allocation5 + $0x1d8] sm:$0xf0]  ;;  %v1154_v54 = vor.u32 %v1335_v47, %v1151_v48  ;;  %v1337_v56 = vld [vmem:[#allocation5 + $0xd4] sm:$0xf0]  ;;  %v1277_v57 = vld [vmem:[#allocation5 + $0x1c8] sm:$0xf] }
  0x4d   : > { %660 = vmatpush.bf16.msra.mxu1 %v1190_v19  ;;  %v1282_v58 = vor.u32 %v1367_v50, %v1279_v51  ;;  %v1369_v59 = vld [vmem:[#allocation5 + $0x1d4] sm:$0xf0]  ;;  %v1331_v60 = vld [vmem:[#allocation5 + $0xac] sm:$0xf]  ;;  %v1135_v61 = vld [vmem:[#allocation5 + $0xb8] sm:$0xf0]  ;;  %v1150_v0 = vor.u32 %v1337_v56, %v1149_v55 }
  0x4e   : > { %679 = vmatpush.bf16.msra.mxu2 %v1066_v20  ;;  %v1363_v62 = vld [vmem:[#allocation5 + $0x1ac] sm:$0xf]  ;;  %v1263_v63 = vld [vmem:[#allocation5 + $0x1b8] sm:$0xf0]  ;;  %v1278_v1 = vor.u32 %v1369_v59, %v1277_v57  ;;  %v1138_v2 = vor.u32 %v1331_v60, %v1135_v61  ;;  %v1133_v3 = vld [vmem:[#allocation5 + $0xa8] sm:$0xf] }
  0x4f   : > { %698 = vmatpush.bf16.msra.mxu3 %v1194_v24  ;;  %v1333_v4 = vld [vmem:[#allocation5 + $0xb4] sm:$0xf0]  ;;  %v1261_v5 = vld [vmem:[#allocation5 + $0x1a8] sm:$0xf]  ;;  %v1266_v6 = vor.u32 %v1363_v62, %v1263_v63  ;;  %v1327_v8 = vld [vmem:[#allocation5 + $0x8c] sm:$0xf] }
  0x50   : > { %642 = vmatpush.bf16.msra.mxu0 %v1046_v31  ;;  %v1365_v7 = vld [vmem:[#allocation5 + $0x1b4] sm:$0xf0]  ;;  %v1119_v9 = vld [vmem:[#allocation5 + $0x98] sm:$0xf0]  ;;  %v1359_v10 = vld [vmem:[#allocation5 + $0x18c] sm:$0xf]  ;;  %v1134_v12 = vor.u32 %v1333_v4, %v1133_v3 }
  0x51   : > { %661 = vmatpush.bf16.msra.mxu1 %v1174_v35  ;;  %v1247_v11 = vld [vmem:[#allocation5 + $0x198] sm:$0xf0]  ;;  %v1117_v13 = vld [vmem:[#allocation5 + $0x88] sm:$0xf]  ;;  %v1262_v14 = vor.u32 %v1365_v7, %v1261_v5  ;;  %v1122_v15 = vor.u32 %v1327_v8, %v1119_v9  ;;  %v1329_v16 = vld [vmem:[#allocation5 + $0x94] sm:$0xf0] }
  0x52   : > { %680 = vmatpush.bf16.msra.mxu2 %v1050_v36  ;;  %v1245_v17 = vld [vmem:[#allocation5 + $0x188] sm:$0xf]  ;;  %v1361_v18 = vld [vmem:[#allocation5 + $0x194] sm:$0xf0]  ;;  %v1250_v19 = vor.u32 %v1359_v10, %v1247_v11  ;;  %v1037_v20 = vld [vmem:[%s1778_s5 + $0x10] sm:$0xf]  ;;  %v1118_v26 = vor.u32 %v1329_v16, %v1117_v13 }
  0x53   : > { %699 = vmatpush.bf16.msra.mxu3 %v1178_v39  ;;  %643 = vmatmul.bf16.vlgmr.msra.gmra.mxu0 %v1792_v44  ;;  %v1323_v21 = vld [vmem:[#allocation5 + $0x6c] sm:$0xf]  ;;  %v1103_v22 = vld [vmem:[#allocation5 + $0x78] sm:$0xf0]  ;;  %v1309_v23 = vld [vmem:[%s1778_s5 + $0x14] sm:$0xf0]  ;;  %v1246_v29 = vor.u32 %v1361_v18, %v1245_v17 }
  0x54   : > { %662 = vmatmul.bf16.vlgmr.msra.gmra.mxu1 %v1794_v49  ;;  %711 = vmatpush.bf16.msrb.mxu0 %v1166_v52  ;;  %v1355_v24 = vld [vmem:[#allocation5 + $0x16c] sm:$0xf]  ;;  %v1231_v25 = vld [vmem:[#allocation5 + $0x178] sm:$0xf0]  ;;  %v1308_v27 = vld [vmem:[%s1778_s5 + $0x14] sm:$0xf]  ;;  %v1106_v30 = vor.u32 %v1323_v21, %v1103_v22  ;;  %v1804_v34 = vor.u32 %v1309_v23, %v1037_v20 }
  0x55   : > { %681 = vmatmul.bf16.vlgmr.msra.gmra.mxu2 %v1792_v44  ;;  %730 = vmatpush.bf16.msrb.mxu1 %v1294_v53  ;;  %v1039_v28 = vld [vmem:[%s1778_s5 + $0x18] sm:$0xf0]  ;;  %v1101_v31 = vld [vmem:[#allocation5 + $0x68] sm:$0xf]  ;;  %v1325_v32 = vld [vmem:[#allocation5 + $0x74] sm:$0xf0]  ;;  %v1234_v35 = vor.u32 %v1355_v24, %v1231_v25 }
  0x56   : > { %749 = vmatpush.bf16.msrb.mxu2 %v1170_v40  ;;  %700 = vmatmul.bf16.vlgmr.msra.gmra.mxu3 %v1794_v49  ;;  %v1229_v33 = vld [vmem:[#allocation5 + $0x168] sm:$0xf]  ;;  %v1357_v36 = vld [vmem:[#allocation5 + $0x174] sm:$0xf0]  ;;  %v1319_v37 = vld [vmem:[#allocation5 + $0x4c] sm:$0xf]  ;;  %v1806_v39 = vor.u32 %v1308_v27, %v1039_v28  ;;  %v1102_v42 = vor.u32 %v1325_v32, %v1101_v31 }
  0x57   : > { %768 = vmatpush.bf16.msrb.mxu3 %v1298_v45  ;;  %v1087_v38 = vld [vmem:[#allocation5 + $0x58] sm:$0xf0]  ;;  %v1351_v40 = vld [vmem:[#allocation5 + $0x14c] sm:$0xf]  ;;  %v1230_v43 = vor.u32 %v1357_v36, %v1229_v33  ;;  %v1085_v46 = vld [vmem:[#allocation5 + $0x48] sm:$0xf] }
  0x58   : > { %712 = vmatpush.bf16.msrb.mxu0 %v1150_v0  ;;  %v1215_v41 = vld [vmem:[#allocation5 + $0x158] sm:$0xf0]  ;;  %v1090_v45 = vor.u32 %v1319_v37, %v1087_v38  ;;  %v1321_v47 = vld [vmem:[#allocation5 + $0x54] sm:$0xf0]  ;;  %v1213_v48 = vld [vmem:[#allocation5 + $0x148] sm:$0xf] }
  0x59   : > { %731 = vmatpush.bf16.msrb.mxu1 %v1278_v1  ;;  %v1218_v50 = vor.u32 %v1351_v40, %v1215_v41  ;;  %v1353_v51 = vld [vmem:[#allocation5 + $0x154] sm:$0xf0]  ;;  %v1315_v52 = vld [vmem:[#allocation5 + $0x2c] sm:$0xf]  ;;  %v1071_v53 = vld [vmem:[#allocation5 + $0x38] sm:$0xf0]  ;;  %v1086_v56 = vor.u32 %v1321_v47, %v1085_v46 }
  0x5a   : > { %750 = vmatpush.bf16.msrb.mxu2 %v1154_v54  ;;  %v1347_v54 = vld [vmem:[#allocation5 + $0x12c] sm:$0xf]  ;;  %v1199_v55 = vld [vmem:[#allocation5 + $0x138] sm:$0xf0]  ;;  %v1214_v57 = vor.u32 %v1353_v51, %v1213_v48  ;;  %v1069_v59 = vld [vmem:[#allocation5 + $0x28] sm:$0xf] }
  0x5b   : > { %769 = vmatpush.bf16.msrb.mxu3 %v1282_v58  ;;  %v1074_v58 = vor.u32 %v1315_v52, %v1071_v53  ;;  %v1317_v60 = vld [vmem:[#allocation5 + $0x34] sm:$0xf0]  ;;  %v1197_v61 = vld [vmem:[#allocation5 + $0x128] sm:$0xf]  ;;  %v1202_v62 = vor.u32 %v1347_v54, %v1199_v55  ;;  %v1311_v0 = vld [vmem:[#allocation5 + $0xc] sm:$0xf] }
  0x5c   : > { %713 = vmatpush.bf16.msrb.mxu0 %v1134_v12  ;;  %v1349_v63 = vld [vmem:[#allocation5 + $0x134] sm:$0xf0]  ;;  %v1055_v1 = vld [vmem:[#allocation5 + $0x18] sm:$0xf0]  ;;  %v1070_v4 = vor.u32 %v1317_v60, %v1069_v59  ;;  %v1053_v7 = vld [vmem:[#allocation5 + $0x8] sm:$0xf] }
  0x5d   : > { %732 = vmatpush.bf16.msrb.mxu1 %v1262_v14  ;;  %v1183_v3 = vld [vmem:[#allocation5 + $0x118] sm:$0xf0]  ;;  %v1198_v5 = vor.u32 %v1349_v63, %v1197_v61  ;;  %v1313_v8 = vld [vmem:[#allocation5 + $0x14] sm:$0xf0]  ;;  %v1181_v10 = vld [vmem:[#allocation5 + $0x108] sm:$0xf] }
  0x5e   : > { %751 = vmatpush.bf16.msrb.mxu2 %v1138_v2  ;;  %v1343_v2 = vld [vmem:[#allocation5 + $0x10c] sm:$0xf]  ;;  %v1345_v11 = vld [vmem:[#allocation5 + $0x114] sm:$0xf0]  ;;  %v1054_v12 = vor.u32 %v1313_v8, %v1053_v7  ;;  %v841_v18 = vld [vmem:[#allocation7 + $0xf0] sm:$0xff]  ;;  %s224_s18 = scalar_lea.vmem [#allocation8], %s1023_s26 }
  0x5f   : > { %770 = vmatpush.bf16.msrb.mxu3 %v1266_v6  ;;  %v1058_v6 = vor.u32 %v1311_v0, %v1055_v1  ;;  %v1186_v9 = vor.u32 %v1343_v2, %v1183_v3  ;;  %v1182_v13 = vor.u32 %v1345_v11, %v1181_v10  ;;  %v826_v14 = vld [vmem:[#allocation7 + $0x78] sm:$0xff]  ;;  %v824_v16 = vld [vmem:[#allocation7 + $0x68] sm:$0xff]  ;;  %v839_v22 = vld [vmem:[#allocation7 + $0xe0] sm:$0xff]  ;;  %s1374_s23 = sshll.u32 %s1691_s16, 5  ;;  %s918_s29 = sshll.u32 %s224_s18, 4  ;;  %s919_s29 = int_to_ptr.vmem [resolvable:$true] %s918_s29 }
  0x60   : > { %714 = vmatpush.bf16.msrb.mxu0 %v1118_v26  ;;  %v842_v17 = vld [vmem:[#allocation7 + $0xf8] sm:$0xff]  ;;  %v840_v20 = vld [vmem:[#allocation7 + $0xe8] sm:$0xff]  ;;  %v819_v23 = vld [vmem:[#allocation7 + $0x40] sm:$0xff]  ;;  %s917_s28 = scalar_lea.hbm %s1858_s3, %s1374_s23  ;;  %s906_s4 = scalar_lea.sflag [#allocation4], %s1772_s20 }
  0x61   : > { %733 = vmatpush.bf16.msrb.mxu1 %v1246_v29  ;;  %v820_v21 = vld [vmem:[#allocation7 + $0x48] sm:$0xff]  ;;  %v838_v24 = vld [vmem:[#allocation7 + $0xd8] sm:$0xff]  ;;  %v837_v26 = vld [vmem:[#allocation7 + $0xd0] sm:$0xff]  ;;  %s920_s30 = sshll.u32 %s917_s28, 4  ;;  %s1590_s22 = scalar_lea.hbm %s1858_s3, 64  ;;  %s921_s30 = int_to_ptr.hbm [resolvable:$true] %s920_s30 }
  0x62   : > { %752 = vmatpush.bf16.msrb.mxu2 %v1122_v15  ;;  %v825_v15 = vld [vmem:[#allocation7 + $0x70] sm:$0xff]  ;;  %v818_v25 = vld [vmem:[#allocation7 + $0x38] sm:$0xff]  ;;  %v836_v28 = vld [vmem:[#allocation7 + $0xc8] sm:$0xff]  ;;  %s1584_s9 = sshra.s32 %s921_s30, 4  ;;  %s1585_s9 = int_to_ptr.hbm [resolvable:$true] %s1584_s9 }
  0x63   : > { %771 = vmatpush.bf16.msrb.mxu3 %v1250_v19  ;;  %648 = vmatmul.bf16.gmra.mxu0 %v1804_v34  ;;  %v821_v19 = vld [vmem:[#allocation7 + $0x50] sm:$0xff]  ;;  %v816_v29 = vld [vmem:[#allocation7 + $0x28] sm:$0xff]  ;;  %v815_v31 = vld [vmem:[#allocation7 + $0x20] sm:$0xff]  ;;  %s1586_s16 = scalar_lea.hbm %s1585_s9, 32  ;;  %p1591_p11 = scmp.lt.s32.totalorder %s1585_s9, %s1858_s3 }
  0x64   : > { %667 = vmatmul.bf16.gmra.mxu1 %v1806_v39  ;;  %715 = vmatpush.bf16.msrb.mxu0 %v1102_v42  ;;  %v817_v27 = vld [vmem:[#allocation7 + $0x30] sm:$0xff]  ;;  %v834_v32 = vld [vmem:[#allocation7 + $0xb8] sm:$0xff]  ;;  %v832_v38 = vld [vmem:[#allocation7 + $0xa8] sm:$0xff]  ;;  %p1587_p1 = scmp.ne.s32.totalorder %s1585_s9, %s1586_s16  ;;  %p1592_p9 = scmp.lt.s32.totalorder %s1590_s22, %s1586_s16 }
  0x65   : > { %686 = vmatmul.bf16.gmra.mxu2 %v1804_v34  ;;  %734 = vmatpush.bf16.msrb.mxu1 %v1230_v43  ;;  %v833_v36 = vld [vmem:[#allocation7 + $0xb0] sm:$0xff]  ;;  %v831_v40 = vld [vmem:[#allocation7 + $0xa0] sm:$0xff]  ;;  %v830_v43 = vld [vmem:[#allocation7 + $0x98] sm:$0xff] }
  0x66   : > { %753 = vmatpush.bf16.msrb.mxu2 %v1106_v30  ;;  %705 = vmatmul.bf16.gmra.mxu3 %v1806_v39  ;;  %v835_v30 = vld [vmem:[#allocation7 + $0xc0] sm:$0xff]  ;;  %v813_v37 = vld [vmem:[#allocation7 + $0x10] sm:$0xff]  ;;  %p1588_p4 = pnand %p1587_p1, %p1742_p5  ;;  %p1593_p2 = por %p1592_p9, %p1591_p11 }
  0x67   : > { %772 = vmatpush.bf16.msrb.mxu3 %v1234_v35  ;;  %v814_v35 = vld [vmem:[#allocation7 + $0x18] sm:$0xff]  ;;  %v811_v42 = vld [vmem:[#allocation7] sm:$0xff]  ;;  %v829_v48 = vld [vmem:[#allocation7 + $0x90] sm:$0xff] }
  0x68   : > { %716 = vmatpush.bf16.msrb.mxu0 %v1086_v56  ;;  %v827_v51 = vld [vmem:[#allocation7 + $0x80] sm:$0xff]  ;;  %p1589_p8 = pneg %p1588_p4 }
  0x69   : > { %735 = vmatpush.bf16.msrb.mxu1 %v1214_v57 }
  0x6a   : > { %754 = vmatpush.bf16.msrb.mxu2 %v1090_v45  ;;  %p1594_p10 = pnand %p1593_p2, %p1589_p8 }
  0x6b   : > { %773 = vmatpush.bf16.msrb.mxu3 %v1218_v50  ;;  %v828_v50 = vld [vmem:[#allocation7 + $0x88] sm:$0xff] }
  0x6c   : > { %717 = vmatpush.bf16.msrb.mxu0 %v1070_v4 }
  0x6d   : > { %736 = vmatpush.bf16.msrb.mxu1 %v1198_v5 }
  0x6e   : > { %755 = vmatpush.bf16.msrb.mxu2 %v1074_v58 }
  0x6f   : > { %774 = vmatpush.bf16.msrb.mxu3 %v1202_v62 }
  0x70   : > { %718 = vmatpush.bf16.msrb.mxu0 %v1054_v12 }
  0x71   : > { %737 = vmatpush.bf16.msrb.mxu1 %v1182_v13 }
  0x72   : > { %756 = vmatpush.bf16.msrb.mxu2 %v1058_v6 }
  0x73   : > { %775 = vmatpush.bf16.msrb.mxu3 %v1186_v9  ;;  %719 = vmatmul.bf16.vlgmr.msrb.gmra.mxu0 %v1792_v44 }
  0x74   : > { %738 = vmatmul.bf16.vlgmr.msrb.gmra.mxu1 %v1794_v49  ;;  %843 = vmatpush.msra.mxu0 %v826_v14 }
  0x75   : > { %757 = vmatmul.bf16.vlgmr.msrb.gmra.mxu2 %v1792_v44  ;;  %v823_v44 = vld [vmem:[#allocation7 + $0x60] sm:$0xff]  ;;  %872 = vmatpush.msra.mxu1 %v842_v17 }
  0x76   : > { %776 = vmatmul.bf16.vlgmr.msrb.gmra.mxu3 %v1794_v49  ;;  %1375 = vmatpush.msra.mxu2 %v826_v14  ;;  %v822_v49 = vld [vmem:[#allocation7 + $0x58] sm:$0xff] }
  0x77   : > { %844 = vmatpush.msra.mxu0 %v825_v15  ;;  %1391 = vmatpush.msra.mxu3 %v842_v17 }
  0x78   : > { %1376 = vmatpush.msra.mxu2 %v825_v15  ;;  %873 = vmatpush.msra.mxu1 %v841_v18 }
  0x79   : > { %845 = vmatpush.msra.mxu0 %v824_v16  ;;  %1392 = vmatpush.msra.mxu3 %v841_v18 }
  0x7a   : > { %1377 = vmatpush.msra.mxu2 %v824_v16  ;;  %874 = vmatpush.msra.mxu1 %v840_v20 }
  0x7b   : > { %846 = vmatpush.msra.mxu0 %v823_v44  ;;  %1393 = vmatpush.msra.mxu3 %v840_v20 }
  0x7c   : > { %1378 = vmatpush.msra.mxu2 %v823_v44  ;;  %875 = vmatpush.msra.mxu1 %v839_v22 }
  0x7d   : > { %847 = vmatpush.msra.mxu0 %v822_v49  ;;  %1394 = vmatpush.msra.mxu3 %v839_v22 }
  0x7e   : > { %1379 = vmatpush.msra.mxu2 %v822_v49  ;;  %876 = vmatpush.msra.mxu1 %v838_v24 }
  0x7f   : > { %848 = vmatpush.msra.mxu0 %v821_v19  ;;  %1395 = vmatpush.msra.mxu3 %v838_v24 }
  0x80   : > { %1380 = vmatpush.msra.mxu2 %v821_v19  ;;  %877 = vmatpush.msra.mxu1 %v837_v26 }
  0x81   : > { %849 = vmatpush.msra.mxu0 %v820_v21  ;;  %1396 = vmatpush.msra.mxu3 %v837_v26 }
  0x82   : > { %1381 = vmatpush.msra.mxu2 %v820_v21  ;;  %878 = vmatpush.msra.mxu1 %v836_v28 }
  0x83   : > { %724 = vmatmul.bf16.gmra.mxu0 %v1804_v34  ;;  %1397 = vmatpush.msra.mxu3 %v836_v28 }
  0x84   : > { %743 = vmatmul.bf16.gmra.mxu1 %v1806_v39  ;;  %850 = vmatpush.msra.mxu0 %v819_v23 }
  0x85   : > { %762 = vmatmul.bf16.gmra.mxu2 %v1804_v34  ;;  %879 = vmatpush.msra.mxu1 %v835_v30 }
  0x86   : > { %781 = vmatmul.bf16.gmra.mxu3 %v1806_v39  ;;  %1382 = vmatpush.msra.mxu2 %v819_v23  ;;  %v812_v39 = vld [vmem:[#allocation7 + $0x8] sm:$0xff] }
  0x87   : > { %851 = vmatpush.msra.mxu0 %v818_v25  ;;  %1398 = vmatpush.msra.mxu3 %v835_v30 }
  0x88   : > { %1383 = vmatpush.msra.mxu2 %v818_v25  ;;  %880 = vmatpush.msra.mxu1 %v834_v32 }
  0x89   : > { %852 = vmatpush.msra.mxu0 %v817_v27  ;;  %1399 = vmatpush.msra.mxu3 %v834_v32 }
  0x8a   : > { %1384 = vmatpush.msra.mxu2 %v817_v27  ;;  %881 = vmatpush.msra.mxu1 %v833_v36 }
  0x8b   : > { %853 = vmatpush.msra.mxu0 %v816_v29  ;;  %1400 = vmatpush.msra.mxu3 %v833_v36 }
  0x8c   : > { %1385 = vmatpush.msra.mxu2 %v816_v29  ;;  %882 = vmatpush.msra.mxu1 %v832_v38 }
  0x8d   : > { %854 = vmatpush.msra.mxu0 %v815_v31  ;;  %1401 = vmatpush.msra.mxu3 %v832_v38 }
  0x8e   : > { %1386 = vmatpush.msra.mxu2 %v815_v31  ;;  %883 = vmatpush.msra.mxu1 %v831_v40 }
  0x8f   : > { %855 = vmatpush.msra.mxu0 %v814_v35  ;;  %1402 = vmatpush.msra.mxu3 %v831_v40 }
  0x90   : > { %1387 = vmatpush.msra.mxu2 %v814_v35  ;;  %884 = vmatpush.msra.mxu1 %v830_v43 }
  0x91   : > { %856 = vmatpush.msra.mxu0 %v813_v37  ;;  %1403 = vmatpush.msra.mxu3 %v830_v43 }
  0x92   : > { %1388 = vmatpush.msra.mxu2 %v813_v37  ;;  %885 = vmatpush.msra.mxu1 %v829_v48 }
  0x93   : > { %857 = vmatpush.msra.mxu0 %v812_v39  ;;  %1404 = vmatpush.msra.mxu3 %v829_v48 }
  0x94   : > { %1389 = vmatpush.msra.mxu2 %v812_v39  ;;  %886 = vmatpush.msra.mxu1 %v828_v50 }
  0x95   : > { %858 = vmatpush.msra.mxu0 %v811_v42  ;;  %1405 = vmatpush.msra.mxu3 %v828_v50 }
  0x96   : > { %1390 = vmatpush.msra.mxu2 %v811_v42  ;;  %887 = vmatpush.msra.mxu1 %v827_v51 }
  0x97   : > { %1406 = vmatpush.msra.mxu3 %v827_v51 }
  0xd0   : > { %v644_v33 = vpop.f32.mrf.mxu0 }
  0xd1   : > { %v663_v34 = vpop.f32.mrf.mxu1 }
  0xd2   : > { %v664_v62 = vadd.f32 %v663_v34, %v644_v33 }
  0xd4   : > { %v787_v2 = vmul.f32 %v664_v62, %v664_v62 }
  0xd8   : > { %v682_v41 = vpop.f32.mrf.mxu2  ;;  %v646_v46 = vpop.f32.mrf.mxu0 }
  0xd9   : > { %v701_v45 = vpop.f32.mrf.mxu3  ;;  %v665_v47 = vpop.f32.mrf.mxu1 }
  0xda   : > { %v702_v4 = vadd.f32 %v701_v45, %v682_v41  ;;  %v666_v8 = vadd.f32 %v665_v47, %v646_v46 }
  0xdc   : > { %v788_v12 = vmul.f32 %v702_v4, %v702_v4  ;;  %v789_v15 = vmul.f32 %v666_v8, %v666_v8 }
  0xe0   : > { %v684_v52 = vpop.f32.mrf.mxu2  ;;  %v649_v54 = vpop.f32.mrf.mxu0 }
  0xe1   : > { %v703_v53 = vpop.f32.mrf.mxu3  ;;  %v668_v55 = vpop.f32.mrf.mxu1 }
  0xe2   : > { %v704_v17 = vadd.f32 %v703_v53, %v684_v52  ;;  %v669_v20 = vadd.f32 %v668_v55, %v649_v54 }
  0xe4   : > { %v790_v24 = vmul.f32 %v704_v17, %v704_v17  ;;  %v791_v27 = vmul.f32 %v669_v20, %v669_v20 }
  0xe8   : > { %v687_v56 = vpop.f32.mrf.mxu2  ;;  %v651_v58 = vpop.f32.mrf.mxu0 }
  0xe9   : > { %v706_v57 = vpop.f32.mrf.mxu3  ;;  %v670_v59 = vpop.f32.mrf.mxu1 }
  0xea   : > { %v707_v30 = vadd.f32 %v706_v57, %v687_v56  ;;  %v671_v34 = vadd.f32 %v670_v59, %v651_v58 }
  0xec   : > { %v792_v38 = vmul.f32 %v707_v30, %v707_v30  ;;  %v793_v41 = vmul.f32 %v671_v34, %v671_v34 }
  0xf0   : > { %v689_v60 = vpop.f32.mrf.mxu2  ;;  %v720_v63 = vpop.f32.mrf.mxu0 }
  0xf1   : > { %v708_v61 = vpop.f32.mrf.mxu3  ;;  %v739_v0 = vpop.f32.mrf.mxu1 }
  0xf2   : > { %v740_v1 = vadd.f32 %v739_v0, %v720_v63  ;;  %v709_v45 = vadd.f32 %v708_v61, %v689_v60 }
  0xf4   : > { %v795_v3 = vmul.f32 %v740_v1, %v740_v1  ;;  %v794_v51 = vmul.f32 %v709_v45, %v709_v45 }
  0xf6   : > { %v803_v5 = vadd.f32 %v795_v3, %v787_v2 }
  0xf8   : > { %v758_v6 = vpop.f32.mrf.mxu2  ;;  %859 = vmatmul.f32.vlgmr.msra.gmra.mxu0 %v803_v5  ;;  %v722_v10 = vpop.f32.mrf.mxu0 }
  0xf9   : > { %v777_v7 = vpop.f32.mrf.mxu3  ;;  %v741_v11 = vpop.f32.mrf.mxu1 }
  0xfa   : > { %v778_v9 = vadd.f32 %v777_v7, %v758_v6  ;;  %v742_v14 = vadd.f32 %v741_v11, %v722_v10 }
  0xfc   : > { %v796_v13 = vmul.f32 %v778_v9, %v778_v9  ;;  %v797_v44 = vmul.f32 %v742_v14, %v742_v14 }
  0xfe   : > { %v804_v16 = vadd.f32 %v796_v13, %v788_v12  ;;  %v805_v18 = vadd.f32 %v797_v44, %v789_v15 }
 0x100   : > { %888 = vmatmul.f32.vlgmr.msra.gmra.mxu1 %v804_v16  ;;  %v760_v49 = vpop.f32.mrf.mxu2  ;;  %862 = vmatmul.f32.gmra.mxu0 %v805_v18  ;;  %v725_v22 = vpop.f32.mrf.mxu0 }
 0x101   : > { %v779_v19 = vpop.f32.mrf.mxu3  ;;  %v744_v23 = vpop.f32.mrf.mxu1 }
 0x102   : > { %v780_v21 = vadd.f32 %v779_v19, %v760_v49  ;;  %v745_v26 = vadd.f32 %v744_v23, %v725_v22 }
 0x104   : > { %v798_v25 = vmul.f32 %v780_v21, %v780_v21  ;;  %v799_v28 = vmul.f32 %v745_v26, %v745_v26 }
 0x106   : > { %v806_v29 = vadd.f32 %v798_v25, %v790_v24  ;;  %v807_v31 = vadd.f32 %v799_v28, %v791_v27 }
 0x108   : > { %891 = vmatmul.f32.gmra.mxu1 %v806_v29  ;;  %v763_v32 = vpop.f32.mrf.mxu2  ;;  %865 = vmatmul.f32.vlgmr.msra.gmra.mxu2 %v807_v31  ;;  %v727_v36 = vpop.f32.mrf.mxu0 }
 0x109   : > { %v782_v33 = vpop.f32.mrf.mxu3  ;;  %v746_v37 = vpop.f32.mrf.mxu1 }
 0x10a   : > { %v783_v35 = vadd.f32 %v782_v33, %v763_v32  ;;  %v747_v40 = vadd.f32 %v746_v37, %v727_v36 }
 0x10c   : > { %v800_v39 = vmul.f32 %v783_v35, %v783_v35  ;;  %v801_v43 = vmul.f32 %v747_v40, %v747_v40 }
 0x10e   : > { %v808_v42 = vadd.f32 %v800_v39, %v792_v38  ;;  %v809_v47 = vadd.f32 %v801_v43, %v793_v41 }
 0x110   : > { %894 = vmatmul.f32.vlgmr.msra.gmra.mxu3 %v808_v42  ;;  %v765_v46 = vpop.f32.mrf.mxu2  ;;  %868 = vmatmul.f32.gmra.mxu2 %v809_v47 }
 0x111   : > { %v784_v48 = vpop.f32.mrf.mxu3 }
 0x112   : > { %v785_v50 = vadd.f32 %v784_v48, %v765_v46 }
 0x114   : > { %v802_v52 = vmul.f32 %v785_v50, %v785_v50 }
 0x116   : > { %v810_v53 = vadd.f32 %v802_v52, %v794_v51 }
 0x118   : > { %897 = vmatmul.f32.gmra.mxu3 %v810_v53 }
 0x175   : > { %v860_v54 = vpop.f32.mrf.mxu0 }
 0x17d   : > { %v889_v55 = vpop.f32.mrf.mxu1  ;;  %v863_v57 = vpop.f32.mrf.mxu0 }
 0x17e   : > { %v890_v56 = vadd.f32 %v889_v55, %v860_v54 }
 0x180   : > { %901 = vst [vmem:[%s224_s18] sm:$0xff] %v890_v56 }
 0x185   : > { %v892_v58 = vpop.f32.mrf.mxu1 }
 0x186   : > { %v893_v59 = vadd.f32 %v892_v58, %v863_v57 }
 0x188   : > { %902 = vst [vmem:[%s224_s18 + $0x8] sm:$0xff] %v893_v59 }
 0x18b   : > { %v866_v60 = vpop.f32.mrf.mxu2 }
 0x193   : > { %v895_v61 = vpop.f32.mrf.mxu3  ;;  %v869_v63 = vpop.f32.mrf.mxu2 }
 0x194   : > { %v896_v62 = vadd.f32 %v895_v61, %v866_v60 }
 0x196   : > { %903 = vst [vmem:[%s224_s18 + $0x10] sm:$0xff] %v896_v62 }
 0x19b   : > { %v898_v0 = vpop.f32.mrf.mxu3 }
 0x19c   : > { %v899_v1 = vadd.f32 %v898_v0, %v869_v63 }
 0x19e   : > { %904 = vst [vmem:[%s224_s18 + $0x18] sm:$0xff] %v899_v1 }
 0x19f   : > { %1597 = shalt.err (!%p1594_p10)
}
 0x1a0   : > { %s1648_s20 = smov 128   ;;  %s1649_s26 = smov 8  }
 0x1a1   : > { %1417 = dma.vmem_to_hbm [thread:$0]  (%p1742_p5), %s919_s29, 512, %s921_s30, %s906_s4, %s1648_s20, %s1648_s20, %s1649_s26  }
 0x1a2 PF: > { %s935_s27 = sand.u32 1, %s1628_s12   ;;  %p1864_p12 = scmp.ge.s32.totalorder %s1640_s15, 2 }
 0x1a3   : > { %s936_s5 = scalar_lea.sflag [#allocation4], %s935_s27 }
 0x1a4   : > { %p1431_p13 = pnand %p1864_p12, %p1705_p6 }
 0x1a6   : > { %p1432_p0 = pneg %p1431_p13 }
 0x1a8   : > { %1623 = dma.done.wait (%p1432_p0), %s936_s5, 512  }
 0x1a9   : > { %1625 = vsyncadd (%p1432_p0), %s936_s5, 4294966784  ;;  %p17_p3 = scmp.ge.s32.totalorder %s1729_s8, 4   ;;  %s1865_s12 = smov %s1632_s13 }
 0x1aa   : > { %s1866_s13 = smov %s1636_s14  ;;  %s1867_s14 = smov %s1738_s11 }
 0x1ab   : > { %s1868_s15 = smov %s1729_s8  ;;  %19 = sbr.rel (!%p17_p3) target bundleno = 6 (0x6), region = 85 }
 0x1b0   :  { %942 = vsyncpa [#allocation3], 1 }
 0x1b1   :  { %944 = vsyncpa [#allocation3 + $0x1], 1 }
 0x1b2   :  { %945 = vsyncpa [#allocation6], 1 }
 0x1b3   :  { %946 = vsyncpa [#allocation4], 1 }
 0x1b4   :  { %948 = vsyncpa [#allocation4 + $0x1], 1 }

</bundles_post_ra>
